<compile_context>
chip_gen: v7x
topology: tpu7x:2x2x1
jax: 0.10.0
libtpu: 0.0.40
codegen_flags: <defaults>
</compile_context>

<pallas_src>
import functools
import math

import jax
import jax.numpy as jnp
from jax.experimental import pallas as pl
from jax.experimental.pallas import tpu as pltpu


def _round_up(x, m):
    return (x + m - 1) // m * m


_MAX_BLOCK_B = 4096  # rows per grid step; tiles stay far under scoped VMEM on all gens


def _choose_block_b(batch):
    """Single step for small batches (per-step overhead dominates there); for
    large batches split into an even number of >=8-row tiles (v7x dual-TC)."""
    if batch <= _MAX_BLOCK_B:
        return batch
    steps = -(-batch // _MAX_BLOCK_B)
    if steps % 2:
        steps += 1
    return _round_up(-(-batch // steps), 8)


def _ptm_kernel(x_ref, wfc_ref, par_ref, wh_ref, bh_ref, msk_ref, o_ref,
                *, layer_width, min_sigma, max_sigma, ln_eps):
    # --- trunk: fc -> LayerNorm -> ReLU (LN / activation math in f32) ----------
    h = jnp.dot(x_ref[...], wfc_ref[...], preferred_element_type=jnp.float32)
    h = h + par_ref[0:1, :]                       # b_fc (padded cols are 0)

    inv_n = 1.0 / float(layer_width)
    mean = jnp.sum(h, axis=-1, keepdims=True) * inv_n
    d = (h - mean) * par_ref[3:4, :]              # mask padded cols -> exact 2-pass var
    var = jnp.sum(d * d, axis=-1, keepdims=True) * inv_n
    h = d * jax.lax.rsqrt(var + ln_eps)
    h = h * par_ref[1:2, :] + par_ref[2:3, :]     # gamma/beta (padded cols -> 0)
    h = jnp.maximum(h, 0.0)

    # --- fused heads: one lane-dense matmul, columns = [ mu | sigma | 0-pad ] --
    y = jnp.dot(h.astype(wh_ref.dtype), wh_ref[...],
                preferred_element_type=jnp.float32) + bh_ref[...]

    # sigma lanes selected with a precomputed {0,1} mask; divide goes to the EUP.
    sig = min_sigma + (max_sigma - min_sigma) * pl.reciprocal(
        1.0 + jnp.exp(-y), approx=True)
    o_ref[...] = (y + msk_ref[...] * (sig - y)).astype(o_ref.dtype)


@functools.partial(
    jax.jit,
    static_argnames=("max_sigma", "min_sigma", "block_b", "stream_dtype"))
def probabilistic_transition_forward(x, w_fc, b_fc, gamma, beta,
                                     w_mu, b_mu, w_sigma, b_sigma,
                                     *, max_sigma=10.0, min_sigma=1e-4,
                                     block_b=None, stream_dtype=jnp.bfloat16):
    """Fused forward of ProbabilisticTransitionModel.  Weights are (in, out).

    x: (B, enc+act); w_fc: (enc+act, W); b_fc/gamma/beta: (W,);
    w_mu/w_sigma: (W, enc); b_mu/b_sigma: (enc,).
    stream_dtype: MXU input dtype for x / weights (bf16 default; f32 for exact
    PyTorch-f32 numerics).  Accumulation and all elementwise math stay f32.
    Returns (mu, sigma), each (B, enc) f32.
    """
    B, din = x.shape
    lw = w_fc.shape[1]
    feat = w_mu.shape[1]
    dhead = 2 * feat

    lw_p = _round_up(lw, 128)
    dout_p = _round_up(dhead, 128)

    bb = _choose_block_b(B) if block_b is None else _round_up(min(block_b, B), 8)
    bp = _round_up(B, bb)
    grid = (bp // bb,)

    f32 = jnp.float32
    sd = jnp.dtype(stream_dtype)
    sb = sd.itemsize

    # x streamed directly (no padded-feature copy in HBM).  Only pad the batch
    # dim in the rare multi-step case where the tile does not divide B.
    xs = x.astype(sd)
    if bp != B:
        xs = jnp.zeros((bp, din), sd).at[:B].set(xs)

    # Small resident parameters (a few KB): pad feature axes to lane multiples.
    wfc_p = jnp.zeros((din, lw_p), sd).at[:, :lw].set(w_fc.astype(sd))
    par = jnp.zeros((4, lw_p), f32)
    par = par.at[0, :lw].set(b_fc.astype(f32))
    par = par.at[1, :lw].set(gamma.astype(f32))
    par = par.at[2, :lw].set(beta.astype(f32))
    par = par.at[3, :lw].set(1.0)                               # hidden-col mask
    w_head = jnp.concatenate([w_mu, w_sigma], axis=1).astype(sd)  # (W, 2F)
    wh_p = jnp.zeros((lw_p, dout_p), sd).at[:lw, :dhead].set(w_head)
    bh_p = jnp.zeros((1, dout_p), f32).at[0, :dhead].set(
        jnp.concatenate([b_mu, b_sigma]).astype(f32))
    msk = jnp.zeros((1, dout_p), f32).at[0, feat:dhead].set(1.0)  # sigma lanes

    # --- VMEM budget (explicit: v5e default scoped VMEM is only 16 MiB) -------
    vmem_est = (2 * bb * din * sb                       # x tiles (double-buffered)
                + 2 * bb * dout_p * 4                   # out tiles
                + 2 * (din * lw_p + lw_p * dout_p) * sb  # resident weights
                + 2 * (4 * lw_p + 2 * dout_p) * 4        # params / bias / mask
                + 3 * bb * (lw_p + dout_p) * 4)          # h / y intermediates headroom
    vmem_limit = int(min(max(vmem_est + (2 << 20), 8 << 20), 32 << 20))

    cost = pl.CostEstimate(
        flops=2 * bp * (din * lw_p + lw_p * dout_p),
        transcendentals=bp * (2 * dout_p + 1),            # exp + recip + rsqrt
        bytes_accessed=(bp * din * sb + bp * dout_p * 4
                        + (din * lw_p + lw_p * dout_p) * sb
                        + (4 * lw_p + 2 * dout_p) * 4),
    )

    kernel = functools.partial(
        _ptm_kernel,
        layer_width=lw,
        min_sigma=float(min_sigma), max_sigma=float(max_sigma), ln_eps=1e-5)

    y = pl.pallas_call(
        kernel,
        out_shape=jax.ShapeDtypeStruct((bp, dout_p), f32),
        grid_spec=pltpu.PrefetchScalarGridSpec(
            num_scalar_prefetch=0,
            grid=grid,
            in_specs=[
                pl.BlockSpec((bb, din), lambda i: (i, 0)),       # x tile (unpadded feats)
                pl.BlockSpec((din, lw_p), lambda i: (0, 0)),     # fc weight (resident)
                pl.BlockSpec((4, lw_p), lambda i: (0, 0)),       # b_fc|gamma|beta|mask
                pl.BlockSpec((lw_p, dout_p), lambda i: (0, 0)),  # fused mu|sigma weight
                pl.BlockSpec((1, dout_p), lambda i: (0, 0)),     # fused head bias
                pl.BlockSpec((1, dout_p), lambda i: (0, 0)),     # sigma-lane mask
            ],
            out_specs=pl.BlockSpec((bb, dout_p), lambda i: (i, 0)),
        ),
        compiler_params=pltpu.CompilerParams(
            dimension_semantics=("parallel",),
            vmem_limit_bytes=vmem_limit,
        ),
        cost_estimate=cost,
    )(xs, wfc_p, par, wh_p, bh_p, msk)

    mu = y[:B, :feat]
    sigma = y[:B, feat:dhead]
    return mu, sigma
    # TODO(synk): sample_prediction's Gaussian reparameterization (mu + sigma*eps)
    # is not part of forward(); it is left to the caller (or pltpu.stateful_normal).


def _linear_init(kw, kb, fan_in, fan_out):
    """Mirror nn.Linear default init; weight stored (in, out) for the kernel."""
    bound = 1.0 / math.sqrt(fan_in)
    w = jax.random.uniform(kw, (fan_in, fan_out), jnp.float32, -bound, bound)
    b = jax.random.uniform(kb, (fan_out,), jnp.float32, -bound, bound)
    return w, b


if __name__ == "__main__":
    encoder_feature_dim = 32
    action_dim = 4
    layer_width = 128
    batch = 32
    max_sigma, min_sigma = 10.0, 1e-4

    key = jax.random.PRNGKey(0)
    keys = jax.random.split(key, 7)
    din = encoder_feature_dim + action_dim

    w_fc, b_fc = _linear_init(keys[0], keys[1], din, layer_width)
    gamma = jnp.ones((layer_width,), jnp.float32)
    beta = jnp.zeros((layer_width,), jnp.float32)
    w_mu, b_mu = _linear_init(keys[2], keys[3], layer_width, encoder_feature_dim)
    w_sigma, b_sigma = _linear_init(keys[4], keys[5], layer_width, encoder_feature_dim)

    x = jax.random.normal(keys[6], (batch, din), jnp.float32)

    mu, sigma = probabilistic_transition_forward(
        x, w_fc, b_fc, gamma, beta, w_mu, b_mu, w_sigma, b_sigma,
        max_sigma=max_sigma, min_sigma=min_sigma)
    mu, sigma = jax.block_until_ready((mu, sigma))

    # Pure-JAX reference with the same bf16-streaming / f32-accumulate numerics
    # as the kernel's default path (LayerNorm / sigmoid math stays f32).
    bf, f32 = jnp.bfloat16, jnp.float32
    h = jnp.dot(x.astype(bf), w_fc.astype(bf), preferred_element_type=f32) + b_fc
    m = jnp.mean(h, axis=-1, keepdims=True)
    v = jnp.mean((h - m) ** 2, axis=-1, keepdims=True)
    h = (h - m) * jax.lax.rsqrt(v + 1e-5) * gamma + beta
    h = jnp.maximum(h, 0.0)
    w_head = jnp.concatenate([w_mu, w_sigma], axis=1).astype(bf)
    b_head = jnp.concatenate([b_mu, b_sigma])
    yref = jnp.dot(h.astype(bf), w_head, preferred_element_type=f32) + b_head
    mu_ref = yref[:, :encoder_feature_dim]
    sig_ref = min_sigma + (max_sigma - min_sigma) * jax.nn.sigmoid(
        yref[:, encoder_feature_dim:])

    assert mu.shape == (batch, encoder_feature_dim)
    assert sigma.shape == (batch, encoder_feature_dim)
    mu_err = float(jnp.max(jnp.abs(mu - mu_ref)))
    sig_err = float(jnp.max(jnp.abs(sigma - sig_ref)))
    assert jnp.allclose(mu, mu_ref, atol=2e-3, rtol=2e-3), mu_err
    assert jnp.allclose(sigma, sig_ref, atol=5e-2, rtol=5e-3), sig_err

    print("KERNEL_OK")
</pallas_src>

<mosaic_0001>
module attributes {stable_mosaic.version = 11 : i64} {
  func.func @_ptm_kernel(%arg0: i32, %arg1: memref<32x36xbf16, #tpu.memory_space<vmem>>, %arg2: memref<36x128xbf16, #tpu.memory_space<vmem>>, %arg3: memref<4x128xf32, #tpu.memory_space<vmem>>, %arg4: memref<128x128xbf16, #tpu.memory_space<vmem>>, %arg5: memref<1x128xf32, #tpu.memory_space<vmem>>, %arg6: memref<1x128xf32, #tpu.memory_space<vmem>>, %arg7: memref<32x128xf32, #tpu.memory_space<vmem>>) attributes {dimension_semantics = [#tpu.dimension_semantics<parallel>], iteration_bounds = array<i64: 1>, scalar_prefetch = 0 : i64, scratch_operands = 0 : i64, tpu.core_type = #tpu.core_type<tc>, window_params = [{transform_indices = @transform_0, window_bounds = array<i64: 32, 36>}, {pipeline_mode = #tpu.pipeline_mode<synchronous>, transform_indices = @transform_1, window_bounds = array<i64: 36, 128>}, {pipeline_mode = #tpu.pipeline_mode<synchronous>, transform_indices = @transform_2, window_bounds = array<i64: 4, 128>}, {pipeline_mode = #tpu.pipeline_mode<synchronous>, transform_indices = @transform_3, window_bounds = array<i64: 128, 128>}, {pipeline_mode = #tpu.pipeline_mode<synchronous>, transform_indices = @transform_4, window_bounds = array<i64: 1, 128>}, {pipeline_mode = #tpu.pipeline_mode<synchronous>, transform_indices = @transform_5, window_bounds = array<i64: 1, 128>}, {transform_indices = @transform_6, window_bounds = array<i64: 32, 128>}]} {
    %c0 = arith.constant 0 : index
    %c0_0 = arith.constant 0 : index
    %0 = vector.load %arg1[%c0, %c0_0] : memref<32x36xbf16, #tpu.memory_space<vmem>>, vector<32x36xbf16>
    %c0_1 = arith.constant 0 : index
    %c0_2 = arith.constant 0 : index
    %1 = vector.load %arg2[%c0_1, %c0_2] : memref<36x128xbf16, #tpu.memory_space<vmem>>, vector<36x128xbf16>
    %cst = arith.constant dense<0.000000e+00> : vector<32x128xf32>
    %2 = tpu.matmul %0, %1, %cst {dimension_numbers = #tpu.dot_dimension_numbers<[1], [0], [0], [1], [0, 0, 1, 1], [], []>} : vector<32x36xbf16>, vector<36x128xbf16>, vector<32x128xf32> -> vector<32x128xf32>
    %c0_3 = arith.constant 0 : index
    %c0_4 = arith.constant 0 : index
    %3 = vector.load %arg3[%c0_3, %c0_4] : memref<4x128xf32, #tpu.memory_space<vmem>>, vector<1x128xf32>
    %4 = vector.broadcast %3 : vector<1x128xf32> to vector<32x128xf32>
    %5 = arith.addf %2, %4 : vector<32x128xf32>
    %cst_5 = arith.constant dense<0.000000e+00> : vector<32xf32>
    %6 = vector.multi_reduction <add>, %5, %cst_5 [1] : vector<32x128xf32> to vector<32xf32>
    %7 = vector.shape_cast %6 : vector<32xf32> to vector<32x1xf32>
    %cst_6 = arith.constant 7.812500e-03 : f32
    %8 = vector.broadcast %cst_6 : f32 to vector<32x1xf32>
    %9 = arith.mulf %7, %8 : vector<32x1xf32>
    %10 = vector.broadcast %9 : vector<32x1xf32> to vector<32x128xf32>
    %11 = arith.subf %5, %10 : vector<32x128xf32>
    %c3 = arith.constant 3 : index
    %c0_7 = arith.constant 0 : index
    %12 = vector.load %arg3[%c3, %c0_7] : memref<4x128xf32, #tpu.memory_space<vmem>>, vector<1x128xf32>
    %13 = vector.broadcast %12 : vector<1x128xf32> to vector<32x128xf32>
    %14 = arith.mulf %11, %13 : vector<32x128xf32>
    %15 = arith.mulf %14, %14 : vector<32x128xf32>
    %cst_8 = arith.constant dense<0.000000e+00> : vector<32xf32>
    %16 = vector.multi_reduction <add>, %15, %cst_8 [1] : vector<32x128xf32> to vector<32xf32>
    %17 = vector.shape_cast %16 : vector<32xf32> to vector<32x1xf32>
    %cst_9 = arith.constant 7.812500e-03 : f32
    %18 = vector.broadcast %cst_9 : f32 to vector<32x1xf32>
    %19 = arith.mulf %17, %18 : vector<32x1xf32>
    %cst_10 = arith.constant 9.99999974E-6 : f32
    %20 = vector.broadcast %cst_10 : f32 to vector<32x1xf32>
    %21 = arith.addf %19, %20 : vector<32x1xf32>
    %22 = math.rsqrt %21 : vector<32x1xf32>
    %23 = vector.broadcast %22 : vector<32x1xf32> to vector<32x128xf32>
    %24 = arith.mulf %14, %23 : vector<32x128xf32>
    %c1 = arith.constant 1 : index
    %c0_11 = arith.constant 0 : index
    %25 = vector.load %arg3[%c1, %c0_11] : memref<4x128xf32, #tpu.memory_space<vmem>>, vector<1x128xf32>
    %26 = vector.broadcast %25 : vector<1x128xf32> to vector<32x128xf32>
    %27 = arith.mulf %24, %26 : vector<32x128xf32>
    %c2 = arith.constant 2 : index
    %c0_12 = arith.constant 0 : index
    %28 = vector.load %arg3[%c2, %c0_12] : memref<4x128xf32, #tpu.memory_space<vmem>>, vector<1x128xf32>
    %29 = vector.broadcast %28 : vector<1x128xf32> to vector<32x128xf32>
    %30 = arith.addf %27, %29 : vector<32x128xf32>
    %cst_13 = arith.constant 0.000000e+00 : f32
    %31 = vector.broadcast %cst_13 : f32 to vector<32x128xf32>
    %32 = arith.maximumf %30, %31 : vector<32x128xf32>
    %33 = arith.truncf %32 : vector<32x128xf32> to vector<32x128xbf16>
    %c0_14 = arith.constant 0 : index
    %c0_15 = arith.constant 0 : index
    %34 = vector.load %arg4[%c0_14, %c0_15] : memref<128x128xbf16, #tpu.memory_space<vmem>>, vector<128x128xbf16>
    %cst_16 = arith.constant dense<0.000000e+00> : vector<32x128xf32>
    %35 = tpu.matmul %33, %34, %cst_16 {dimension_numbers = #tpu.dot_dimension_numbers<[1], [0], [0], [1], [0, 0, 1, 1], [], []>} : vector<32x128xbf16>, vector<128x128xbf16>, vector<32x128xf32> -> vector<32x128xf32>
    %c0_17 = arith.constant 0 : index
    %c0_18 = arith.constant 0 : index
    %36 = vector.load %arg5[%c0_17, %c0_18] : memref<1x128xf32, #tpu.memory_space<vmem>>, vector<1x128xf32>
    %37 = vector.broadcast %36 : vector<1x128xf32> to vector<32x128xf32>
    %38 = arith.addf %35, %37 : vector<32x128xf32>
    %cst_19 = arith.constant 0.000000e+00 : f32
    %39 = vector.broadcast %cst_19 : f32 to vector<32x128xf32>
    %40 = arith.subf %39, %38 : vector<32x128xf32>
    %41 = math.exp %40 : vector<32x128xf32>
    %cst_20 = arith.constant 1.000000e+00 : f32
    %42 = vector.broadcast %cst_20 : f32 to vector<32x128xf32>
    %43 = arith.addf %42, %41 : vector<32x128xf32>
    %44 = tpu.reciprocal %43 {approx = true} : vector<32x128xf32> -> vector<32x128xf32>
    %cst_21 = arith.constant 9.99989986 : f32
    %45 = vector.broadcast %cst_21 : f32 to vector<32x128xf32>
    %46 = arith.mulf %45, %44 : vector<32x128xf32>
    %cst_22 = arith.constant 9.99999974E-5 : f32
    %47 = vector.broadcast %cst_22 : f32 to vector<32x128xf32>
    %48 = arith.addf %47, %46 : vector<32x128xf32>
    %c0_23 = arith.constant 0 : index
    %c0_24 = arith.constant 0 : index
    %49 = vector.load %arg6[%c0_23, %c0_24] : memref<1x128xf32, #tpu.memory_space<vmem>>, vector<1x128xf32>
    %50 = arith.subf %48, %38 : vector<32x128xf32>
    %51 = vector.broadcast %49 : vector<1x128xf32> to vector<32x128xf32>
    %52 = arith.mulf %51, %50 : vector<32x128xf32>
    %53 = arith.addf %38, %52 : vector<32x128xf32>
    %c0_25 = arith.constant 0 : index
    %c0_26 = arith.constant 0 : index
    %54 = vector.load %arg7[%c0_25, %c0_26] : memref<32x128xf32, #tpu.memory_space<vmem>>, vector<32x128xf32>
    tpu.vector_store %arg7[%c0_25, %c0_26], %53 {strides = array<i32>} : memref<32x128xf32, #tpu.memory_space<vmem>>, vector<32x128xf32>,
    return
  }
  func.func @transform_0(%arg0: i32) -> (i32, i32) {
    %c0_i32 = arith.constant 0 : i32
    %c0_i32_0 = arith.constant 0 : i32
    return %arg0, %c0_i32 : i32, i32
  }
  func.func @transform_1(%arg0: i32) -> (i32, i32) {
    %c0_i32 = arith.constant 0 : i32
    %c0_i32_0 = arith.constant 0 : i32
    %c0_i32_1 = arith.constant 0 : i32
    return %c0_i32, %c0_i32_0 : i32, i32
  }
  func.func @transform_2(%arg0: i32) -> (i32, i32) {
    %c0_i32 = arith.constant 0 : i32
    %c0_i32_0 = arith.constant 0 : i32
    %c0_i32_1 = arith.constant 0 : i32
    return %c0_i32, %c0_i32_0 : i32, i32
  }
  func.func @transform_3(%arg0: i32) -> (i32, i32) {
    %c0_i32 = arith.constant 0 : i32
    %c0_i32_0 = arith.constant 0 : i32
    %c0_i32_1 = arith.constant 0 : i32
    return %c0_i32, %c0_i32_0 : i32, i32
  }
  func.func @transform_4(%arg0: i32) -> (i32, i32) {
    %c0_i32 = arith.constant 0 : i32
    %c0_i32_0 = arith.constant 0 : i32
    %c0_i32_1 = arith.constant 0 : i32
    return %c0_i32, %c0_i32_0 : i32, i32
  }
  func.func @transform_5(%arg0: i32) -> (i32, i32) {
    %c0_i32 = arith.constant 0 : i32
    %c0_i32_0 = arith.constant 0 : i32
    %c0_i32_1 = arith.constant 0 : i32
    return %c0_i32, %c0_i32_0 : i32, i32
  }
  func.func @transform_6(%arg0: i32) -> (i32, i32) {
    %c0_i32 = arith.constant 0 : i32
    %c0_i32_0 = arith.constant 0 : i32
    return %arg0, %c0_i32 : i32, i32
  }
}

</mosaic_0001>

<bundles_post_ra>
// kernel: probabilistic_transition_forward.1
= control target key start
LH: loop header
LB: loop body
LE: loop exit
PB: predicated region body
PF: predicated region fallthrough
CT: control target
= control target key end

     0   :  { %vm63_vm0 = vcmask 293888   ;;  %vm70_vm1 = vcmask 1041408   ;;  %s583_s1 = inlined_call_operand.vmem [shape: bf16[36,128], index: 1, kind: input, shape index: {}]   ;;  %s584_s0 = inlined_call_operand.vmem [shape: bf16[32,36], index: 0, kind: input, shape index: {}]   ;;  %s585_s2 = inlined_call_operand.vmem [shape: f32[4,128], index: 2, kind: input, shape index: {}]   ;;  %s586_s3 = inlined_call_operand.vmem [shape: bf16[128,128], index: 3, kind: input, shape index: {}]   ;;  %s587_s4 = inlined_call_operand.vmem [shape: f32[1,128], index: 4, kind: input, shape index: {}]   ;;  %s588_s5 = inlined_call_operand.vmem [shape: f32[1,128], index: 5, kind: input, shape index: {}]   ;;  %s589_s6 = inlined_call_operand.vmem [shape: f32[32,128], index: 6, kind: output, shape index: {}]  }
   0x1   :  { %v442_v0 = vld [vmem:[%s583_s1] sm:$0xff]   ;;  %v443_v1 = vld [vmem:[%s583_s1 + $0x8] sm:$0xff]   ;;  %v444_v3 = vld [vmem:[%s583_s1 + $0x10] ss:$0 sps:$4 sm:$0x33]  }
   0x2   :  { %411 = vmatprep.subr.bf16.mxu0 %v442_v0  ;;  %v445_v2 = vld [vmem:[%s584_s0] sm:$0xff]   ;;  %v72_v4 = vsel %vm70_vm1, %v444_v3, 0  ;;  %v446_v5 = vld [vmem:[%s584_s0 + $0x8] sm:$0xff]   ;;  %v449_v38 = vld [vmem:[%s586_s3 + $0x10] sm:$0xff]  }
   0x3   :  { %412 = vmatpush3.bf16.msra.mxu0 %v442_v0  ;;  %417 = vmatprep.mubr.msk.bf16.mxu0 %vm63_vm0, %v445_v2  ;;  %v375_v6 = vld [vmem:[%s585_s2] ss:$0 sm:$0xff]  ;;  %v383_v19 = vld [vmem:[%s585_s2 + $0x3] ss:$0 sm:$0xff]  ;;  %v448_v37 = vld [vmem:[%s586_s3 + $0x8] sm:$0xff]  }
   0x4   :  { %413 = vmatprep.subr.bf16.mxu0 %v443_v1  ;;  %v447_v36 = vld [vmem:[%s586_s3] sm:$0xff]   ;;  %v450_v39 = vld [vmem:[%s586_s3 + $0x18] sm:$0xff]   ;;  %v452_v41 = vld [vmem:[%s586_s3 + $0x28] sm:$0xff]  }
   0x5   :  { %421 = vmatprep.subr.bf16.mxu1 %v447_v36  ;;  %v451_v40 = vld [vmem:[%s586_s3 + $0x20] sm:$0xff]   ;;  %v453_v42 = vld [vmem:[%s586_s3 + $0x30] sm:$0xff]   ;;  %v454_v43 = vld [vmem:[%s586_s3 + $0x38] sm:$0xff]  }
   0x6   :  { %422 = vmatpush3.bf16.msra.mxu1 %v447_v36  ;;  %v384_v57 = vld [vmem:[%s585_s2 + $0x1] ss:$0 sm:$0xff]  ;;  %v385_v61 = vld [vmem:[%s585_s2 + $0x2] ss:$0 sm:$0xff] }
   0x7   :  { %414 = vmatpush3.bf16.msra.mxu0 %v443_v1  ;;  %423 = vmatprep.subr.bf16.mxu1 %v448_v37 }
   0x8   :  { %441 = vmatprep.subr.msk.bf16.mxu0 %vm70_vm1, %v444_v3 }
   0xa   :  { %424 = vmatpush3.bf16.msra.mxu1 %v448_v37 }
   0xb   :  { %416 = vmatpush3.bf16.msra.mxu0 %v72_v4  ;;  %425 = vmatprep.subr.bf16.mxu1 %v449_v38 }
   0xe   :  { %418 = vmatmul.mubr.msk.bf16.vlgmr.msra.gmra.mrb[0].mxu0 %vm63_vm0, %v446_v5  ;;  %426 = vmatpush3.bf16.msra.mxu1 %v449_v38 }
   0xf   :  { %427 = vmatprep.subr.bf16.mxu1 %v450_v39 }
  0x12   :  { %428 = vmatpush3.bf16.msra.mxu1 %v450_v39 }
  0x13   :  { %429 = vmatprep.subr.bf16.mxu1 %v451_v40 }
  0x16   :  { %430 = vmatpush3.bf16.msra.mxu1 %v451_v40 }
  0x17   :  { %431 = vmatprep.subr.bf16.mxu1 %v452_v41 }
  0x1a   :  { %432 = vmatpush3.bf16.msra.mxu1 %v452_v41 }
  0x1b   :  { %433 = vmatprep.subr.bf16.mxu1 %v453_v42 }
  0x1e   :  { %434 = vmatpush3.bf16.msra.mxu1 %v453_v42 }
  0x1f   :  { %435 = vmatprep.subr.bf16.mxu1 %v454_v43 }
  0x22   :  { %436 = vmatpush3.bf16.msra.mxu1 %v454_v43 }
  0xe1   :  { %v419_v7 = vpop.f32.mrb[0].mxu0 }
  0xe2   :  { %v117_v8 = vadd.f32 %v419_v7, %v375_v6  ;;  %v108_v9 = vpop.f32.mrb[1].mxu0 }
  0xe3   :  { %v109_v10 = vadd.f32 %v375_v6, %v108_v9  ;;  %v420_v11 = vpop.f32.mrb[2].mxu0 }
  0xe4   :  { %127 = vadd.xlane.f32.xlu1 %v117_v8  ;;  %v111_v12 = vpop.f32.mrb[3].mxu0  ;;  %v120_v13 = vadd.f32 %v420_v11, %v375_v6 }
  0xe5   :  { %123 = vadd.xlane.f32.xlu0 %v109_v10  ;;  %v112_v14 = vadd.f32 %v375_v6, %v111_v12 }
  0xe8   :  { %129 = vadd.xlane.f32.xlu1 %v120_v13 }
  0xe9   :  { %125 = vadd.xlane.f32.xlu0 %v112_v14 }
 0x171   :  { %v128_v15 = vpop.xlane.xlu1 %127 }
 0x172   :  { %v133_v16 = vmul.f32 0.0078125, %v128_v15  ;;  %v124_v17 = vpop.xlane.xlu0 %123 }
 0x173   :  { %v131_v18 = vmul.f32 0.0078125, %v124_v17 }
 0x174   :  { %v137_v20 = vsub.f32 %v117_v8, %v133_v16  ;;  %v386_v16 = vld [vmem:[%s587_s4] ss:$0 sm:$0xff] }
 0x175   :  { %v135_v21 = vsub.f32 %v109_v10, %v131_v18  ;;  %v130_v22 = vpop.xlane.xlu1 %129 }
 0x176   :  { %v134_v23 = vmul.f32 0.0078125, %v130_v22  ;;  %v126_v24 = vpop.xlane.xlu0 %125  ;;  %v146_v30 = vmul.f32 %v383_v19, %v137_v20 }
 0x177   :  { %v132_v25 = vmul.f32 0.0078125, %v126_v24  ;;  %v144_v26 = vmul.f32 %v383_v19, %v135_v21 }
 0x178   :  { %v138_v27 = vsub.f32 %v120_v13, %v134_v23  ;;  %v150_v32 = vmul.f32 %v146_v30, %v146_v30 }
 0x179   :  { %v136_v28 = vsub.f32 %v112_v14, %v132_v25  ;;  %v148_v29 = vmul.f32 %v144_v26, %v144_v26 }
 0x17a   :  { %v147_v34 = vmul.f32 %v383_v19, %v138_v27 }
 0x17b   :  { %152 = vadd.xlane.f32.xlu0 %v148_v29  ;;  %v145_v31 = vmul.f32 %v383_v19, %v136_v28 }
 0x17c   :  { %v151_v35 = vmul.f32 %v147_v34, %v147_v34 }
 0x17d   :  { %v149_v33 = vmul.f32 %v145_v31, %v145_v31 }
 0x17f   :  { %156 = vadd.xlane.f32.xlu0 %v150_v32  ;;  %154 = vadd.xlane.f32.xlu1 %v149_v33 }
 0x183   :  { %158 = vadd.xlane.f32.xlu1 %v151_v35 }
 0x208   :  { %v153_v44 = vpop.xlane.xlu0 %152 }
 0x209   :  { %v160_v45 = vmul.f32 0.0078125, %v153_v44 }
 0x20b   :  { %v164_v46 = vadd.f32 1e-05, %v160_v45 }
 0x20c   :  { %v155_v47 = vpop.xlane.xlu1 %154  ;;  %v157_v48 = vpop.xlane.xlu0 %156 }
 0x20d   :  { %455 = vrsqrt.f32 %v164_v46  ;;  %v161_v49 = vmul.f32 0.0078125, %v155_v47  ;;  %v162_v50 = vmul.f32 0.0078125, %v157_v48 }
 0x20f   :  { %v165_v51 = vadd.f32 1e-05, %v161_v49  ;;  %v166_v52 = vadd.f32 1e-05, %v162_v50  ;;  %v395_v49 = vld [vmem:[%s588_s5] ss:$0 sm:$0xff] }
 0x210   :  { %v159_v53 = vpop.xlane.xlu1 %158 }
 0x211   :  { %457 = vrsqrt.f32 %v165_v51  ;;  %v163_v54 = vmul.f32 0.0078125, %v159_v53 }
 0x212   :  { %459 = vrsqrt.f32 %v166_v52 }
 0x213   :  { %v167_v55 = vadd.f32 1e-05, %v163_v54 }
 0x215   :  { %461 = vrsqrt.f32 %v167_v55 }
 0x217   :  { %v456_v56 = vpop.eup %455 }
 0x218   :  { %v172_v58 = vmul.f32 %v456_v56, %v144_v26 }
 0x21a   :  { %v181_v59 = vmul.f32 %v384_v57, %v172_v58 }
 0x21b   :  { %v458_v60 = vpop.eup %457 }
 0x21c   :  { %v460_v62 = vpop.eup %459  ;;  %v173_v63 = vmul.f32 %v458_v60, %v145_v31  ;;  %v190_v2 = vadd.f32 %v385_v61, %v181_v59 }
 0x21d   :  { %v174_v0 = vmul.f32 %v460_v62, %v146_v30 }
 0x21e   :  { %v182_v1 = vmul.f32 %v384_v57, %v173_v63  ;;  %v194_v7 = vmax.f32 %v190_v2, 0.0 }
 0x21f   :  { %v462_v3 = vpop.eup %461  ;;  %v183_v4 = vmul.f32 %v384_v57, %v174_v0 }
 0x220   :  { %v191_v5 = vadd.f32 %v385_v61, %v182_v1  ;;  %v175_v6 = vmul.f32 %v462_v3, %v147_v34 }
 0x221   :  { %v192_v10 = vadd.f32 %v385_v61, %v183_v4 }
 0x222   :  { %v195_v8 = vmax.f32 %v191_v5, 0.0  ;;  %v184_v9 = vmul.f32 %v384_v57, %v175_v6 }
 0x223   :  { %v196_v13 = vmax.f32 %v192_v10, 0.0 }
 0x224   :  { %v198_v11 = vpack.c.bf16 %v195_v8, %v194_v7  ;;  %v193_v12 = vadd.f32 %v385_v61, %v184_v9 }
 0x226   :  { %437 = vmatprep.mubr.bf16.mxu1 %v198_v11  ;;  %v197_v14 = vmax.f32 %v193_v12, 0.0 }
 0x228   :  { %v199_v15 = vpack.c.bf16 %v197_v14, %v196_v13 }
 0x22a   :  { %438 = vmatmul.mubr.bf16.vlgmr.msra.gmra.mrb[0].mxu1 %v199_v15 }
 0x2fd   :  { %v439_v17 = vpop.f32.mrb[0].mxu1 }
 0x2fe   :  { %v314_v18 = vadd.f32 %v439_v17, %v386_v16  ;;  %v305_v19 = vpop.f32.mrb[1].mxu1 }
 0x2ff   :  { %v306_v20 = vadd.f32 %v386_v16, %v305_v19  ;;  %v440_v21 = vpop.f32.mrb[2].mxu1 }
 0x300   :  { %v322_v22 = vsub.f32 0.0, %v314_v18  ;;  %v317_v23 = vadd.f32 %v440_v21, %v386_v16  ;;  %v308_v24 = vpop.f32.mrb[3].mxu1 }
 0x301   :  { %v320_v25 = vsub.f32 0.0, %v306_v20  ;;  %v309_v26 = vadd.f32 %v386_v16, %v308_v24 }
 0x302   :  { %v328_v27 = vmul.f32 1.442695, %v322_v22  ;;  %v323_v28 = vsub.f32 0.0, %v317_v23 }
 0x303   :  { %v324_v29 = vmul.f32 1.442695, %v320_v25  ;;  %v321_v30 = vsub.f32 0.0, %v309_v26 }
 0x304   :  { %463 = vpow2.f32 %v328_v27  ;;  %v330_v31 = vmul.f32 1.442695, %v323_v28 }
 0x305   :  { %465 = vpow2.f32 %v324_v29  ;;  %v326_v32 = vmul.f32 1.442695, %v321_v30 }
 0x306   :  { %467 = vpow2.f32 %v330_v31 }
 0x307   :  { %469 = vpow2.f32 %v326_v32 }
 0x30e   :  { %v464_v33 = vpop.eup %463 }
 0x30f   :  { %v466_v34 = vpop.eup %465  ;;  %v334_v35 = vadd.f32 1.0, %v464_v33 }
 0x310   :  { %v468_v36 = vpop.eup %467  ;;  %v332_v37 = vadd.f32 1.0, %v466_v34 }
 0x311   :  { %v470_v38 = vpop.eup %469  ;;  %471 = vrcp.f32 %v334_v35  ;;  %v335_v39 = vadd.f32 1.0, %v468_v36 }
 0x312   :  { %473 = vrcp.f32 %v332_v37  ;;  %v333_v40 = vadd.f32 1.0, %v470_v38 }
 0x313   :  { %475 = vrcp.f32 %v335_v39 }
 0x314   :  { %477 = vrcp.f32 %v333_v40 }
 0x31b   :  { %v472_v41 = vpop.eup %471 }
 0x31c   :  { %v474_v42 = vpop.eup %473  ;;  %v342_v43 = vmul.f32 9.9999, %v472_v41 }
 0x31d   :  { %v476_v44 = vpop.eup %475  ;;  %v340_v45 = vmul.f32 9.9999, %v474_v42 }
 0x31e   :  { %v478_v46 = vpop.eup %477  ;;  %v346_v47 = vadd.f32 0.0001, %v342_v43  ;;  %v343_v48 = vmul.f32 9.9999, %v476_v44 }
 0x31f   :  { %v344_v50 = vadd.f32 0.0001, %v340_v45  ;;  %v341_v51 = vmul.f32 9.9999, %v478_v46 }
 0x320   :  { %v351_v52 = vsub.f32 %v346_v47, %v314_v18  ;;  %v347_v53 = vadd.f32 0.0001, %v343_v48 }
 0x321   :  { %v349_v54 = vsub.f32 %v344_v50, %v306_v20  ;;  %v345_v55 = vadd.f32 0.0001, %v341_v51 }
 0x322   :  { %v361_v56 = vmul.f32 %v395_v49, %v351_v52  ;;  %v352_v57 = vsub.f32 %v347_v53, %v317_v23 }
 0x323   :  { %v359_v58 = vmul.f32 %v395_v49, %v349_v54  ;;  %v350_v59 = vsub.f32 %v345_v55, %v309_v26 }
 0x324   :  { %v365_v60 = vadd.f32 %v361_v56, %v314_v18  ;;  %v362_v61 = vmul.f32 %v395_v49, %v352_v57 }
 0x325   :  { %v363_v62 = vadd.f32 %v359_v58, %v306_v20  ;;  %v360_v63 = vmul.f32 %v395_v49, %v350_v59 }
 0x326   :  { %369 = vst [vmem:[%s589_s6 + $0x10] sm:$0xff] %v365_v60  ;;  %v366_v0 = vadd.f32 %v362_v61, %v317_v23 }
 0x327   :  { %367 = vst [vmem:[%s589_s6] sm:$0xff] %v363_v62  ;;  %v364_v1 = vadd.f32 %v360_v63, %v309_v26 }
 0x328   :  { %370 = vst [vmem:[%s589_s6 + $0x18] sm:$0xff] %v366_v0 }
 0x329   :  { %368 = vst [vmem:[%s589_s6 + $0x8] sm:$0xff] %v364_v1 }

</bundles_post_ra>
